<compile_context>
chip_gen: v5e
topology: v5e:2x2
jax: 0.10.0
libtpu: 0.0.40
codegen_flags: <defaults>
</compile_context>

<pallas_src>
import functools

import jax
import jax.numpy as jnp
from jax.experimental import pallas as pl
from jax.experimental.pallas import tpu as pltpu

_LANES = 128


def _normalize_kernel(x_ref, o_ref, *, mean, std, sign, out_dtype):
    # Cast to f32 inside the kernel (saves wrapper-side astype HBM passes and
    # keeps the HBM read at the native input width).
    x = x_ref[...].astype(jnp.float32)
    if sign == -1:
        y = (x - mean) * (1.0 / std)
    else:
        y = x * std + mean
    o_ref[...] = y.astype(out_dtype)


def normalize(x, mean=127.5, std=51.0, sign=-1, *, row_tile=4096):
    """Elementwise normalize matching the PyTorch `Normalize` module.

    mean/std/sign are baked as compile-time constants (they are fixed at
    module construction in the PyTorch spec).
    """
    orig_shape = x.shape
    in_dtype = x.dtype
    # PyTorch semantics: arithmetic with python floats keeps float dtype for
    # float tensors and promotes integer tensors to float. Never cast back to
    # an integer dtype.
    out_dtype = in_dtype if jnp.issubdtype(in_dtype, jnp.floating) else jnp.float32

    n = x.size
    rows = pl.cdiv(n, _LANES)
    flat = x.reshape(-1)
    pad = rows * _LANES - n
    if pad:
        # Rare path: only when numel isn't a multiple of 128 lanes. Single copy.
        flat = jnp.pad(flat, (0, pad))
    slab = flat.reshape(rows, _LANES)  # reshape of contiguous data: no copy

    # Row tile: large (default 4096 rows -> 2 MiB f32 block) to amortize
    # per-grid-step overhead; clamp to the array and keep sublane-aligned.
    rt = min(int(row_tile), rows)
    if rt < rows:
        rt = max(8, (rt // 8) * 8)
    grid = (pl.cdiv(rows, rt),)  # partial last block is masked by Pallas

    # VMEM budget: double-buffered input + output blocks + slack.
    in_blk = rt * _LANES * jnp.dtype(in_dtype).itemsize
    out_blk = rt * _LANES * jnp.dtype(out_dtype).itemsize
    vmem_bytes = 2 * (in_blk + out_blk) + (2 << 20)
    vmem_bytes = int(min(max(vmem_bytes, 16 << 20), 48 << 20))

    kernel = functools.partial(
        _normalize_kernel,
        mean=float(mean),
        std=float(std),
        sign=int(sign),
        out_dtype=out_dtype,
    )

    out = pl.pallas_call(
        kernel,
        out_shape=jax.ShapeDtypeStruct((rows, _LANES), out_dtype),
        grid_spec=pltpu.PrefetchScalarGridSpec(
            num_scalar_prefetch=0,
            grid=grid,
            in_specs=[pl.BlockSpec((rt, _LANES), lambda i: (i, 0))],
            out_specs=pl.BlockSpec((rt, _LANES), lambda i: (i, 0)),
        ),
        compiler_params=pltpu.CompilerParams(
            dimension_semantics=("parallel",),  # lets v7x shard steps over 2 TCs
            vmem_limit_bytes=vmem_bytes,
        ),
    )(slab)

    out = out.reshape(-1)
    if pad:
        out = out[:n]
    return out.reshape(orig_shape)


if __name__ == "__main__":
    key = jax.random.PRNGKey(0)

    # 1) float32 NCHW image-like input in [0, 255]
    x = jax.random.uniform(key, (2, 4, 16, 16), dtype=jnp.float32) * 255.0

    # sign = -1 (default): (x - 127.5) / 51.0
    y = normalize(x, mean=127.5, std=51.0, sign=-1)
    jax.block_until_ready(y)
    y_ref = (x - 127.5) / 51.0
    assert y.dtype == jnp.float32
    assert jnp.allclose(y, y_ref, atol=1e-5, rtol=1e-5), "sign=-1 mismatch"

    # sign = +1: x * 51.0 + 127.5
    z = normalize(y, mean=127.5, std=51.0, sign=1)
    jax.block_until_ready(z)
    z_ref = y_ref * 51.0 + 127.5
    assert jnp.allclose(z, z_ref, atol=1e-4, rtol=1e-5), "sign=+1 mismatch"

    # 2) integer (uint8) input -> float32 output (PyTorch-style promotion)
    xu8 = (jax.random.uniform(key, (2, 4, 16, 16)) * 255.0).astype(jnp.uint8)
    yu = normalize(xu8)
    jax.block_until_ready(yu)
    yu_ref = (xu8.astype(jnp.float32) - 127.5) / 51.0
    assert yu.dtype == jnp.float32
    assert jnp.allclose(yu, yu_ref, atol=1e-5, rtol=1e-5), "uint8 mismatch"

    # 3) shape whose numel is NOT a multiple of 128 (exercises the tail path)
    xt = jax.random.uniform(key, (3, 3, 7, 5), dtype=jnp.float32) * 255.0
    yt = normalize(xt)
    jax.block_until_ready(yt)
    assert jnp.allclose(yt, (xt - 127.5) / 51.0, atol=1e-5, rtol=1e-5), "tail mismatch"

    print("KERNEL_OK")
</pallas_src>

<mosaic_0001>
module attributes {stable_mosaic.version = 11 : i64} {
  func.func @_normalize_kernel(%arg0: i32, %arg1: memref<16x128xf32, #tpu.memory_space<vmem>>, %arg2: memref<16x128xf32, #tpu.memory_space<vmem>>) attributes {dimension_semantics = [#tpu.dimension_semantics<parallel>], iteration_bounds = array<i64: 1>, scalar_prefetch = 0 : i64, scratch_operands = 0 : i64, tpu.core_type = #tpu.core_type<tc>, window_params = [{transform_indices = @transform_0, window_bounds = array<i64: 16, 128>}, {transform_indices = @transform_1, window_bounds = array<i64: 16, 128>}]} {
    %c0 = arith.constant 0 : index
    %c0_0 = arith.constant 0 : index
    %0 = vector.load %arg1[%c0, %c0_0] : memref<16x128xf32, #tpu.memory_space<vmem>>, vector<16x128xf32>
    %cst = arith.constant 1.275000e+02 : f32
    %1 = vector.broadcast %cst : f32 to vector<16x128xf32>
    %2 = arith.subf %0, %1 : vector<16x128xf32>
    %cst_1 = arith.constant 0.0196078438 : f32
    %3 = vector.broadcast %cst_1 : f32 to vector<16x128xf32>
    %4 = arith.mulf %2, %3 : vector<16x128xf32>
    %c0_2 = arith.constant 0 : index
    %c0_3 = arith.constant 0 : index
    %5 = vector.load %arg2[%c0_2, %c0_3] : memref<16x128xf32, #tpu.memory_space<vmem>>, vector<16x128xf32>
    tpu.vector_store %arg2[%c0_2, %c0_3], %4 {strides = array<i32>} : memref<16x128xf32, #tpu.memory_space<vmem>>, vector<16x128xf32>,
    return
  }
  func.func @transform_0(%arg0: i32) -> (i32, i32) {
    %c0_i32 = arith.constant 0 : i32
    %c0_i32_0 = arith.constant 0 : i32
    return %arg0, %c0_i32 : i32, i32
  }
  func.func @transform_1(%arg0: i32) -> (i32, i32) {
    %c0_i32 = arith.constant 0 : i32
    %c0_i32_0 = arith.constant 0 : i32
    return %arg0, %c0_i32 : i32, i32
  }
}

</mosaic_0001>

<bundles_post_ra>
// kernel: tpu_custom_call.1
= control target key start
LH: loop header
LB: loop body
LE: loop exit
PB: predicated region body
PF: predicated region fallthrough
CT: control target
= control target key end

     0   :  { %6 = vsyncpa [#allocation3], 0  ;;  %s130_s0 = inlined_call_operand.hbm [shape: f32[16,128], index: 0, kind: input, shape index: {}]   ;;  %s131_s1 = inlined_call_operand.hbm [shape: f32[16,128], index: 1, kind: output, shape index: {}]  }
   0x1   :  { %7 = vsyncpa [#allocation4], 0  ;;  %s12_s8 = sshll.u32 %s130_s0, 4  ;;  %s110_s9 = smov [#allocation2]   ;;  %s13_s8 = int_to_ptr.hbm [resolvable:$true] %s12_s8 }
   0x2   :  { %s14_s10 = sshll.u32 %s110_s9, 4  ;;  %s111_s11 = smov 128   ;;  %s15_s10 = int_to_ptr.vmem [resolvable:$true] %s14_s10 }
   0x3   :  { %s112_s12 = smov 8  }
   0x4   :  { %20 = dma.hbm_to_vmem [thread:$0]  %s13_s8, 256, %s15_s10, [#allocation3], %s111_s11, %s111_s11, %s112_s12  }
   0x5   :  { %106 = dma.done.wait [#allocation3], 256  }
   0x6   :  { %107 = vsyncadd [#allocation3], 4294967040  ;;  %v25_v0 = vld [vmem:[#allocation2] sm:$0xff]  ;;  %v26_v1 = vld [vmem:[#allocation2 + $0x8] sm:$0xff]  ;;  %s113_s13 = smov [#allocation5]   ;;  %s39_s17 = sshll.u32 %s131_s1, 4  ;;  %s40_s17 = int_to_ptr.hbm [resolvable:$true] %s39_s17 }
   0x7   :  { %v52_v2 = vadd.f32 -127.5, %v25_v0  ;;  %v53_v3 = vadd.f32 -127.5, %v26_v1  ;;  %s37_s14 = sshll.u32 %s113_s13, 4  ;;  %s38_s14 = int_to_ptr.vmem [resolvable:$true] %s37_s14 }
   0x9   :  { %v29_v4 = vmul.f32 0.019607844, %v52_v2  ;;  %v30_v5 = vmul.f32 0.019607844, %v53_v3 }
   0xb   :  { %31 = vst [vmem:[#allocation5] sm:$0xff] %v29_v4 }
   0xc   :  { %32 = vst [vmem:[#allocation5 + $0x8] sm:$0xff] %v30_v5 }
   0xd   :  { %45 = dma.vmem_to_hbm [thread:$0]  %s38_s14, 256, %s40_s17, [#allocation4], %s111_s11, %s111_s11, %s112_s12  }
   0xe   :  { %108 = dma.done.wait [#allocation4], 256  }
   0xf   :  { %109 = vsyncadd [#allocation4], 4294967040 }
  0x10   :  { %50 = vsyncpa [#allocation3], 1 }
  0x11   :  { %51 = vsyncpa [#allocation4], 1 }

</bundles_post_ra>
